<compile_context>
chip_gen: v6e
topology: v6e:2x2x1
jax: 0.10.0
libtpu: 0.0.40
codegen_flags: <defaults>
</compile_context>

<pallas_src>
import functools

import jax
import jax.numpy as jnp
from jax.experimental import pallas as pl
from jax.experimental.pallas import tpu as pltpu

block_size = 8
n_embd = 32


def _mha_kernel(x_ref, w_ref, out_ref, *, B, T, num_heads, head_size):
    """Single invocation: fused QKV projection + all heads of causal attention.

    x_ref:   (B*T, C)            float32
    w_ref:   (C, 3*NH*H)         float32  -- [Q_all*scale | K_all | V_all]
    out_ref: (B, T, NH*H)        float32  -- heads concatenated on lanes
    """
    x = x_ref[...]                                   # (BT, C)
    w = w_ref[...]                                   # (C, 3*NH*H)
    H = head_size
    NHH = num_heads * H

    # One MXU matmul for every projection of every head (scale pre-folded into Wq).
    qkv = jnp.dot(x, w, preferred_element_type=jnp.float32)     # (BT, 3*NH*H)
    # Tile-aligned leading-dim split (BT -> B, T with T a multiple of 8): cheap.
    qkv3 = qkv.reshape(B, T, 3 * NHH)
    q_all = qkv3[:, :, :NHH]
    k_all = qkv3[:, :, NHH:2 * NHH]
    v_all = qkv3[:, :, 2 * NHH:]

    # Causal (T, T) mask built once; broadcast over the batch dim of the scores.
    row = jax.lax.broadcasted_iota(jnp.int32, (T, T), 0)
    col = jax.lax.broadcasted_iota(jnp.int32, (T, T), 1)
    causal = col <= row

    for h in range(num_heads):                       # short static loop, unrolled
        q = q_all[:, :, h * H:(h + 1) * H]           # (B, T, H)
        k = k_all[:, :, h * H:(h + 1) * H]
        v = v_all[:, :, h * H:(h + 1) * H]

        # Per-batch (T, T) scores: linear in B, cross-batch work never computed.
        wei = jnp.einsum('btd,bsd->bts', q, k,
                         preferred_element_type=jnp.float32)    # (B, T, T)
        wei = jnp.where(causal, wei, -jnp.inf)

        # Numerically-stable softmax; diagonal always unmasked -> no NaN rows.
        wei = wei - jnp.max(wei, axis=-1, keepdims=True)
        p = jnp.exp(wei)
        s = jnp.sum(p, axis=-1, keepdims=True)
        inv = pl.reciprocal(s, approx=True)          # EUP slot
        inv = inv * (2.0 - s * inv)                  # one Newton step -> f32 accuracy

        # Normalize AFTER the PV matmul (linear): keeps the reciprocal chain off
        # the MXU input dependency path and shrinks the multiply to (B, T, H).
        o = jnp.einsum('bts,bsd->btd', p, v,
                       preferred_element_type=jnp.float32) * inv  # (B, T, H)

        # Direct per-head store into its lane slice of the output.
        out_ref[:, :, h * H:(h + 1) * H] = o.astype(out_ref.dtype)


def pack_mha_weights(wq, wk, wv, scale):
    """One-time (init-time) packing: 3 x (NH, C, H) -> (C, 3*NH*H).

    Columns are laid out [Q_all | K_all | V_all]; head h of each group occupies
    columns [h*H : (h+1)*H] within the group. The attention scale is folded into
    the Q columns so the kernel never multiplies scores by it.
    """
    num_heads, C, H = wq.shape

    def pack(w):  # (NH, C, H) -> (C, NH*H)
        return jnp.transpose(w, (1, 0, 2)).reshape(C, num_heads * H)

    return jnp.concatenate([pack(wq * scale), pack(wk), pack(wv)], axis=-1)


def multi_head_attention(x, w_qkv, *, num_heads, head_size):
    """x: (B, T, C); w_qkv: packed (C, 3*NH*H) -> (B, T, NH*H)."""
    B, T, C = x.shape
    NHH = num_heads * head_size

    x2 = x.reshape(B * T, C)          # free leading-dim collapse (no data movement)

    kernel = functools.partial(_mha_kernel, B=B, T=T,
                               num_heads=num_heads, head_size=head_size)

    return pl.pallas_call(
        kernel,
        out_shape=jax.ShapeDtypeStruct((B, T, NHH), jnp.float32),
        grid_spec=pltpu.PrefetchScalarGridSpec(
            num_scalar_prefetch=0,
            grid=(1,),   # single step: at B*T=16 any grid split is pure overhead
            in_specs=[
                pl.BlockSpec((B * T, C), lambda i: (0, 0)),
                pl.BlockSpec((C, 3 * NHH), lambda i: (0, 0)),
            ],
            out_specs=pl.BlockSpec((B, T, NHH), lambda i: (0, 0, 0)),
        ),
        compiler_params=pltpu.CompilerParams(
            dimension_semantics=("arbitrary",)),
    )(x2, w_qkv)


def _reference(x, wk, wq, wv):
    """Pure-JAX reference mirroring the PyTorch module exactly."""
    B, T, C = x.shape
    outs = []
    for h in range(wk.shape[0]):
        k = x @ wk[h]
        q = x @ wq[h]
        v = x @ wv[h]
        wei = (q @ jnp.swapaxes(k, -2, -1)) * (C ** -0.5)
        tril = jnp.tril(jnp.ones((T, T)))
        wei = jnp.where(tril == 0, -jnp.inf, wei)
        wei = jax.nn.softmax(wei, axis=-1)
        outs.append(wei @ v)
    return jnp.concatenate(outs, axis=-1)


if __name__ == "__main__":
    B = 2
    T = block_size              # 8
    C = n_embd                  # 32
    num_heads = 4
    head_size = C // num_heads  # 8

    key = jax.random.PRNGKey(0)
    kx, kk, kq, kv = jax.random.split(key, 4)

    x = jax.random.normal(kx, (B, T, C), dtype=jnp.float32)
    # "Linear(n_embd, head_size, bias=False)" weights per head, stored (NH, in, out)
    wk = jax.random.normal(kk, (num_heads, C, head_size), dtype=jnp.float32) * 0.1
    wq = jax.random.normal(kq, (num_heads, C, head_size), dtype=jnp.float32) * 0.1
    wv = jax.random.normal(kv, (num_heads, C, head_size), dtype=jnp.float32) * 0.1

    # One-time, init-time weight packing (hoisted out of the per-call hot path).
    w_qkv = jax.block_until_ready(
        pack_mha_weights(wq, wk, wv, scale=float(C) ** -0.5))

    out = multi_head_attention(x, w_qkv, num_heads=num_heads, head_size=head_size)
    out = jax.block_until_ready(out)

    ref = _reference(x, wk, wq, wv)
    assert out.shape == (B, T, num_heads * head_size)
    assert jnp.allclose(out, ref, atol=1e-4, rtol=1e-4), "mismatch vs reference"

    print("KERNEL_OK")
</pallas_src>

<mosaic_0001>
module attributes {stable_mosaic.version = 11 : i64} {
  func.func @_mha_kernel(%arg0: i32, %arg1: memref<16x32xf32, #tpu.memory_space<vmem>>, %arg2: memref<32x96xf32, #tpu.memory_space<vmem>>, %arg3: memref<2x8x32xf32, #tpu.memory_space<vmem>>) attributes {dimension_semantics = [#tpu.dimension_semantics<arbitrary>], iteration_bounds = array<i64: 1>, scalar_prefetch = 0 : i64, scratch_operands = 0 : i64, tpu.core_type = #tpu.core_type<tc>, window_params = [{pipeline_mode = #tpu.pipeline_mode<synchronous>, transform_indices = @transform_0, window_bounds = array<i64: 16, 32>}, {pipeline_mode = #tpu.pipeline_mode<synchronous>, transform_indices = @transform_1, window_bounds = array<i64: 32, 96>}, {pipeline_mode = #tpu.pipeline_mode<synchronous>, transform_indices = @transform_2, window_bounds = array<i64: 2, 8, 32>}]} {
    %c0 = arith.constant 0 : index
    %c0_0 = arith.constant 0 : index
    %0 = vector.load %arg1[%c0, %c0_0] : memref<16x32xf32, #tpu.memory_space<vmem>>, vector<16x32xf32>
    %c0_1 = arith.constant 0 : index
    %c0_2 = arith.constant 0 : index
    %1 = vector.load %arg2[%c0_1, %c0_2] : memref<32x96xf32, #tpu.memory_space<vmem>>, vector<32x96xf32>
    %cst = arith.constant dense<0.000000e+00> : vector<16x96xf32>
    %2 = tpu.matmul %0, %1, %cst {dimension_numbers = #tpu.dot_dimension_numbers<[1], [0], [0], [1], [0, 0, 1, 1], [], []>} : vector<16x32xf32>, vector<32x96xf32>, vector<16x96xf32> -> vector<16x96xf32>
    %3 = vector.shape_cast %2 : vector<16x96xf32> to vector<2x8x96xf32>
    %4 = vector.extract_strided_slice %3 {offsets = [0, 0, 0], sizes = [2, 8, 32], strides = [1, 1, 1]} : vector<2x8x96xf32> to vector<2x8x32xf32>
    %5 = vector.extract_strided_slice %3 {offsets = [0, 0, 32], sizes = [2, 8, 32], strides = [1, 1, 1]} : vector<2x8x96xf32> to vector<2x8x32xf32>
    %6 = vector.extract_strided_slice %3 {offsets = [0, 0, 64], sizes = [2, 8, 32], strides = [1, 1, 1]} : vector<2x8x96xf32> to vector<2x8x32xf32>
    %7 = tpu.iota {dimensions = array<i32: 0>} : vector<8x8xi32>
    %8 = tpu.iota {dimensions = array<i32: 1>} : vector<8x8xi32>
    %9 = arith.cmpi sle, %8, %7 : vector<8x8xi32>
    %10 = vector.extract_strided_slice %4 {offsets = [0, 0, 0], sizes = [2, 8, 8], strides = [1, 1, 1]} : vector<2x8x32xf32> to vector<2x8x8xf32>
    %11 = vector.extract_strided_slice %5 {offsets = [0, 0, 0], sizes = [2, 8, 8], strides = [1, 1, 1]} : vector<2x8x32xf32> to vector<2x8x8xf32>
    %12 = vector.extract_strided_slice %6 {offsets = [0, 0, 0], sizes = [2, 8, 8], strides = [1, 1, 1]} : vector<2x8x32xf32> to vector<2x8x8xf32>
    "tpu.trace_start"() <{level = 10 : i32, message = "btd,bsd->bts"}> : () -> ()
    %cst_3 = arith.constant dense<0.000000e+00> : vector<2x8x8xf32>
    %13 = tpu.matmul %10, %11, %cst_3 {dimension_numbers = #tpu.dot_dimension_numbers<[2], [2], [1], [1], [0, 0, 0, 1, 1, 1], [0], [0]>} : vector<2x8x8xf32>, vector<2x8x8xf32>, vector<2x8x8xf32> -> vector<2x8x8xf32>
    %cst_4 = arith.constant 0xFF800000 : f32
    "tpu.trace_stop"() : () -> ()
    %14 = vector.shape_cast %9 : vector<8x8xi1> to vector<1x8x8xi1>
    %15 = vector.broadcast %14 : vector<1x8x8xi1> to vector<2x8x8xi1>
    %16 = vector.broadcast %cst_4 : f32 to vector<2x8x8xf32>
    %17 = arith.select %15, %13, %16 : vector<2x8x8xi1>, vector<2x8x8xf32>
    %cst_5 = arith.constant dense<0xFF800000> : vector<2x8xf32>
    %18 = vector.multi_reduction <maximumf>, %17, %cst_5 [2] : vector<2x8x8xf32> to vector<2x8xf32>
    %19 = vector.shape_cast %18 : vector<2x8xf32> to vector<2x8x1xf32>
    %20 = vector.broadcast %19 : vector<2x8x1xf32> to vector<2x8x8xf32>
    %21 = arith.subf %17, %20 : vector<2x8x8xf32>
    %22 = math.exp %21 : vector<2x8x8xf32>
    %cst_6 = arith.constant dense<0.000000e+00> : vector<2x8xf32>
    %23 = vector.multi_reduction <add>, %22, %cst_6 [2] : vector<2x8x8xf32> to vector<2x8xf32>
    %24 = vector.shape_cast %23 : vector<2x8xf32> to vector<2x8x1xf32>
    %25 = tpu.reciprocal %24 {approx = true} : vector<2x8x1xf32> -> vector<2x8x1xf32>
    %26 = arith.mulf %24, %25 : vector<2x8x1xf32>
    %cst_7 = arith.constant 2.000000e+00 : f32
    %27 = vector.broadcast %cst_7 : f32 to vector<2x8x1xf32>
    %28 = arith.subf %27, %26 : vector<2x8x1xf32>
    %29 = arith.mulf %25, %28 : vector<2x8x1xf32>
    "tpu.trace_start"() <{level = 10 : i32, message = "bts,bsd->btd"}> : () -> ()
    %cst_8 = arith.constant dense<0.000000e+00> : vector<2x8x8xf32>
    %30 = tpu.matmul %22, %12, %cst_8 {dimension_numbers = #tpu.dot_dimension_numbers<[2], [1], [1], [2], [0, 0, 0, 1, 1, 2], [0], [0]>} : vector<2x8x8xf32>, vector<2x8x8xf32>, vector<2x8x8xf32> -> vector<2x8x8xf32>
    "tpu.trace_stop"() : () -> ()
    %31 = vector.broadcast %29 : vector<2x8x1xf32> to vector<2x8x8xf32>
    %32 = arith.mulf %30, %31 : vector<2x8x8xf32>
    %c0_9 = arith.constant 0 : index
    %c0_10 = arith.constant 0 : index
    %c0_11 = arith.constant 0 : index
    %33 = vector.load %arg3[%c0_9, %c0_10, %c0_11] : memref<2x8x32xf32, #tpu.memory_space<vmem>>, vector<2x8x8xf32>
    tpu.vector_store %arg3[%c0_9, %c0_10, %c0_11], %32 {strides = array<i32>} : memref<2x8x32xf32, #tpu.memory_space<vmem>>, vector<2x8x8xf32>,
    %34 = vector.extract_strided_slice %4 {offsets = [0, 0, 8], sizes = [2, 8, 8], strides = [1, 1, 1]} : vector<2x8x32xf32> to vector<2x8x8xf32>
    %35 = vector.extract_strided_slice %5 {offsets = [0, 0, 8], sizes = [2, 8, 8], strides = [1, 1, 1]} : vector<2x8x32xf32> to vector<2x8x8xf32>
    %36 = vector.extract_strided_slice %6 {offsets = [0, 0, 8], sizes = [2, 8, 8], strides = [1, 1, 1]} : vector<2x8x32xf32> to vector<2x8x8xf32>
    "tpu.trace_start"() <{level = 10 : i32, message = "btd,bsd->bts"}> : () -> ()
    %cst_12 = arith.constant dense<0.000000e+00> : vector<2x8x8xf32>
    %37 = tpu.matmul %34, %35, %cst_12 {dimension_numbers = #tpu.dot_dimension_numbers<[2], [2], [1], [1], [0, 0, 0, 1, 1, 1], [0], [0]>} : vector<2x8x8xf32>, vector<2x8x8xf32>, vector<2x8x8xf32> -> vector<2x8x8xf32>
    %cst_13 = arith.constant 0xFF800000 : f32
    "tpu.trace_stop"() : () -> ()
    %38 = vector.shape_cast %9 : vector<8x8xi1> to vector<1x8x8xi1>
    %39 = vector.broadcast %38 : vector<1x8x8xi1> to vector<2x8x8xi1>
    %40 = vector.broadcast %cst_13 : f32 to vector<2x8x8xf32>
    %41 = arith.select %39, %37, %40 : vector<2x8x8xi1>, vector<2x8x8xf32>
    %cst_14 = arith.constant dense<0xFF800000> : vector<2x8xf32>
    %42 = vector.multi_reduction <maximumf>, %41, %cst_14 [2] : vector<2x8x8xf32> to vector<2x8xf32>
    %43 = vector.shape_cast %42 : vector<2x8xf32> to vector<2x8x1xf32>
    %44 = vector.broadcast %43 : vector<2x8x1xf32> to vector<2x8x8xf32>
    %45 = arith.subf %41, %44 : vector<2x8x8xf32>
    %46 = math.exp %45 : vector<2x8x8xf32>
    %cst_15 = arith.constant dense<0.000000e+00> : vector<2x8xf32>
    %47 = vector.multi_reduction <add>, %46, %cst_15 [2] : vector<2x8x8xf32> to vector<2x8xf32>
    %48 = vector.shape_cast %47 : vector<2x8xf32> to vector<2x8x1xf32>
    %49 = tpu.reciprocal %48 {approx = true} : vector<2x8x1xf32> -> vector<2x8x1xf32>
    %50 = arith.mulf %48, %49 : vector<2x8x1xf32>
    %cst_16 = arith.constant 2.000000e+00 : f32
    %51 = vector.broadcast %cst_16 : f32 to vector<2x8x1xf32>
    %52 = arith.subf %51, %50 : vector<2x8x1xf32>
    %53 = arith.mulf %49, %52 : vector<2x8x1xf32>
    "tpu.trace_start"() <{level = 10 : i32, message = "bts,bsd->btd"}> : () -> ()
    %cst_17 = arith.constant dense<0.000000e+00> : vector<2x8x8xf32>
    %54 = tpu.matmul %46, %36, %cst_17 {dimension_numbers = #tpu.dot_dimension_numbers<[2], [1], [1], [2], [0, 0, 0, 1, 1, 2], [0], [0]>} : vector<2x8x8xf32>, vector<2x8x8xf32>, vector<2x8x8xf32> -> vector<2x8x8xf32>
    "tpu.trace_stop"() : () -> ()
    %55 = vector.broadcast %53 : vector<2x8x1xf32> to vector<2x8x8xf32>
    %56 = arith.mulf %54, %55 : vector<2x8x8xf32>
    %c0_18 = arith.constant 0 : index
    %c0_19 = arith.constant 0 : index
    %c8 = arith.constant 8 : index
    %57 = vector.load %arg3[%c0_18, %c0_19, %c8] : memref<2x8x32xf32, #tpu.memory_space<vmem>>, vector<2x8x8xf32>
    tpu.vector_store %arg3[%c0_18, %c0_19, %c8], %56 {strides = array<i32>} : memref<2x8x32xf32, #tpu.memory_space<vmem>>, vector<2x8x8xf32>,
    %58 = vector.extract_strided_slice %4 {offsets = [0, 0, 16], sizes = [2, 8, 8], strides = [1, 1, 1]} : vector<2x8x32xf32> to vector<2x8x8xf32>
    %59 = vector.extract_strided_slice %5 {offsets = [0, 0, 16], sizes = [2, 8, 8], strides = [1, 1, 1]} : vector<2x8x32xf32> to vector<2x8x8xf32>
    %60 = vector.extract_strided_slice %6 {offsets = [0, 0, 16], sizes = [2, 8, 8], strides = [1, 1, 1]} : vector<2x8x32xf32> to vector<2x8x8xf32>
    "tpu.trace_start"() <{level = 10 : i32, message = "btd,bsd->bts"}> : () -> ()
    %cst_20 = arith.constant dense<0.000000e+00> : vector<2x8x8xf32>
    %61 = tpu.matmul %58, %59, %cst_20 {dimension_numbers = #tpu.dot_dimension_numbers<[2], [2], [1], [1], [0, 0, 0, 1, 1, 1], [0], [0]>} : vector<2x8x8xf32>, vector<2x8x8xf32>, vector<2x8x8xf32> -> vector<2x8x8xf32>
    %cst_21 = arith.constant 0xFF800000 : f32
    "tpu.trace_stop"() : () -> ()
    %62 = vector.shape_cast %9 : vector<8x8xi1> to vector<1x8x8xi1>
    %63 = vector.broadcast %62 : vector<1x8x8xi1> to vector<2x8x8xi1>
    %64 = vector.broadcast %cst_21 : f32 to vector<2x8x8xf32>
    %65 = arith.select %63, %61, %64 : vector<2x8x8xi1>, vector<2x8x8xf32>
    %cst_22 = arith.constant dense<0xFF800000> : vector<2x8xf32>
    %66 = vector.multi_reduction <maximumf>, %65, %cst_22 [2] : vector<2x8x8xf32> to vector<2x8xf32>
    %67 = vector.shape_cast %66 : vector<2x8xf32> to vector<2x8x1xf32>
    %68 = vector.broadcast %67 : vector<2x8x1xf32> to vector<2x8x8xf32>
    %69 = arith.subf %65, %68 : vector<2x8x8xf32>
    %70 = math.exp %69 : vector<2x8x8xf32>
    %cst_23 = arith.constant dense<0.000000e+00> : vector<2x8xf32>
    %71 = vector.multi_reduction <add>, %70, %cst_23 [2] : vector<2x8x8xf32> to vector<2x8xf32>
    %72 = vector.shape_cast %71 : vector<2x8xf32> to vector<2x8x1xf32>
    %73 = tpu.reciprocal %72 {approx = true} : vector<2x8x1xf32> -> vector<2x8x1xf32>
    %74 = arith.mulf %72, %73 : vector<2x8x1xf32>
    %cst_24 = arith.constant 2.000000e+00 : f32
    %75 = vector.broadcast %cst_24 : f32 to vector<2x8x1xf32>
    %76 = arith.subf %75, %74 : vector<2x8x1xf32>
    %77 = arith.mulf %73, %76 : vector<2x8x1xf32>
    "tpu.trace_start"() <{level = 10 : i32, message = "bts,bsd->btd"}> : () -> ()
    %cst_25 = arith.constant dense<0.000000e+00> : vector<2x8x8xf32>
    %78 = tpu.matmul %70, %60, %cst_25 {dimension_numbers = #tpu.dot_dimension_numbers<[2], [1], [1], [2], [0, 0, 0, 1, 1, 2], [0], [0]>} : vector<2x8x8xf32>, vector<2x8x8xf32>, vector<2x8x8xf32> -> vector<2x8x8xf32>
    "tpu.trace_stop"() : () -> ()
    %79 = vector.broadcast %77 : vector<2x8x1xf32> to vector<2x8x8xf32>
    %80 = arith.mulf %78, %79 : vector<2x8x8xf32>
    %c0_26 = arith.constant 0 : index
    %c0_27 = arith.constant 0 : index
    %c16 = arith.constant 16 : index
    %81 = vector.load %arg3[%c0_26, %c0_27, %c16] : memref<2x8x32xf32, #tpu.memory_space<vmem>>, vector<2x8x8xf32>
    tpu.vector_store %arg3[%c0_26, %c0_27, %c16], %80 {strides = array<i32>} : memref<2x8x32xf32, #tpu.memory_space<vmem>>, vector<2x8x8xf32>,
    %82 = vector.extract_strided_slice %4 {offsets = [0, 0, 24], sizes = [2, 8, 8], strides = [1, 1, 1]} : vector<2x8x32xf32> to vector<2x8x8xf32>
    %83 = vector.extract_strided_slice %5 {offsets = [0, 0, 24], sizes = [2, 8, 8], strides = [1, 1, 1]} : vector<2x8x32xf32> to vector<2x8x8xf32>
    %84 = vector.extract_strided_slice %6 {offsets = [0, 0, 24], sizes = [2, 8, 8], strides = [1, 1, 1]} : vector<2x8x32xf32> to vector<2x8x8xf32>
    "tpu.trace_start"() <{level = 10 : i32, message = "btd,bsd->bts"}> : () -> ()
    %cst_28 = arith.constant dense<0.000000e+00> : vector<2x8x8xf32>
    %85 = tpu.matmul %82, %83, %cst_28 {dimension_numbers = #tpu.dot_dimension_numbers<[2], [2], [1], [1], [0, 0, 0, 1, 1, 1], [0], [0]>} : vector<2x8x8xf32>, vector<2x8x8xf32>, vector<2x8x8xf32> -> vector<2x8x8xf32>
    %cst_29 = arith.constant 0xFF800000 : f32
    "tpu.trace_stop"() : () -> ()
    %86 = vector.shape_cast %9 : vector<8x8xi1> to vector<1x8x8xi1>
    %87 = vector.broadcast %86 : vector<1x8x8xi1> to vector<2x8x8xi1>
    %88 = vector.broadcast %cst_29 : f32 to vector<2x8x8xf32>
    %89 = arith.select %87, %85, %88 : vector<2x8x8xi1>, vector<2x8x8xf32>
    %cst_30 = arith.constant dense<0xFF800000> : vector<2x8xf32>
    %90 = vector.multi_reduction <maximumf>, %89, %cst_30 [2] : vector<2x8x8xf32> to vector<2x8xf32>
    %91 = vector.shape_cast %90 : vector<2x8xf32> to vector<2x8x1xf32>
    %92 = vector.broadcast %91 : vector<2x8x1xf32> to vector<2x8x8xf32>
    %93 = arith.subf %89, %92 : vector<2x8x8xf32>
    %94 = math.exp %93 : vector<2x8x8xf32>
    %cst_31 = arith.constant dense<0.000000e+00> : vector<2x8xf32>
    %95 = vector.multi_reduction <add>, %94, %cst_31 [2] : vector<2x8x8xf32> to vector<2x8xf32>
    %96 = vector.shape_cast %95 : vector<2x8xf32> to vector<2x8x1xf32>
    %97 = tpu.reciprocal %96 {approx = true} : vector<2x8x1xf32> -> vector<2x8x1xf32>
    %98 = arith.mulf %96, %97 : vector<2x8x1xf32>
    %cst_32 = arith.constant 2.000000e+00 : f32
    %99 = vector.broadcast %cst_32 : f32 to vector<2x8x1xf32>
    %100 = arith.subf %99, %98 : vector<2x8x1xf32>
    %101 = arith.mulf %97, %100 : vector<2x8x1xf32>
    "tpu.trace_start"() <{level = 10 : i32, message = "bts,bsd->btd"}> : () -> ()
    %cst_33 = arith.constant dense<0.000000e+00> : vector<2x8x8xf32>
    %102 = tpu.matmul %94, %84, %cst_33 {dimension_numbers = #tpu.dot_dimension_numbers<[2], [1], [1], [2], [0, 0, 0, 1, 1, 2], [0], [0]>} : vector<2x8x8xf32>, vector<2x8x8xf32>, vector<2x8x8xf32> -> vector<2x8x8xf32>
    "tpu.trace_stop"() : () -> ()
    %103 = vector.broadcast %101 : vector<2x8x1xf32> to vector<2x8x8xf32>
    %104 = arith.mulf %102, %103 : vector<2x8x8xf32>
    %c0_34 = arith.constant 0 : index
    %c0_35 = arith.constant 0 : index
    %c24 = arith.constant 24 : index
    %105 = vector.load %arg3[%c0_34, %c0_35, %c24] : memref<2x8x32xf32, #tpu.memory_space<vmem>>, vector<2x8x8xf32>
    tpu.vector_store %arg3[%c0_34, %c0_35, %c24], %104 {strides = array<i32>} : memref<2x8x32xf32, #tpu.memory_space<vmem>>, vector<2x8x8xf32>,
    return
  }
  func.func @transform_0(%arg0: i32) -> (i32, i32) {
    %c0_i32 = arith.constant 0 : i32
    %c0_i32_0 = arith.constant 0 : i32
    %c0_i32_1 = arith.constant 0 : i32
    return %c0_i32, %c0_i32_0 : i32, i32
  }
  func.func @transform_1(%arg0: i32) -> (i32, i32) {
    %c0_i32 = arith.constant 0 : i32
    %c0_i32_0 = arith.constant 0 : i32
    %c0_i32_1 = arith.constant 0 : i32
    return %c0_i32, %c0_i32_0 : i32, i32
  }
  func.func @transform_2(%arg0: i32) -> (i32, i32, i32) {
    %c0_i32 = arith.constant 0 : i32
    %c0_i32_0 = arith.constant 0 : i32
    %c0_i32_1 = arith.constant 0 : i32
    %c0_i32_2 = arith.constant 0 : i32
    return %c0_i32, %c0_i32_0, %c0_i32_1 : i32, i32, i32
  }
}

</mosaic_0001>

<bundles_post_ra>
// kernel: tpu_custom_call.1
= control target key start
LH: loop header
LB: loop body
LE: loop exit
PB: predicated region body
PF: predicated region fallthrough
CT: control target
= control target key end

     0   :  { %7 = vsyncpa [#allocation3], 0  ;;  %s2049_s0 = inlined_call_operand.hbm [shape: f32[16,32], index: 0, kind: input, shape index: {}]   ;;  %s2050_s1 = inlined_call_operand.hbm [shape: f32[32,96], index: 1, kind: input, shape index: {}]   ;;  %s2051_s2 = inlined_call_operand.hbm [shape: f32[2,8,32], index: 2, kind: output, shape index: {}]  }
   0x1   :  { %8 = vsyncpa [#allocation6], 0 }
   0x2   :  { %9 = vsyncpa [#allocation4], 0  ;;  %s1812_s9 = smov [#allocation2]  }
   0x3   :  { %s15_s10 = sshll.u32 %s1812_s9, 4  ;;  %s16_s10 = int_to_ptr.vmem [resolvable:$true] %s15_s10 }
   0x4   :  { %s1754_s11 = scalar_lea.vmem %s16_s10, 256  ;;  %p1759_p1 = scmp.lt.s32.totalorder %s16_s10, %s16_s10 }
   0x5   :  { %p1755_p0 = scmp.ne.s32.totalorder %s16_s10, %s1754_s11  ;;  %p1760_p2 = scmp.lt.s32.totalorder %s1754_s11, %s1754_s11 }
   0x7   :  { %p1761_p3 = por %p1760_p2, %p1759_p1 }
   0x9   :  { %p1762_p4 = pnand %p1761_p3, %p1755_p0 }
   0xb   :  { %1765 = shalt.err (!%p1762_p4)
}
   0xc   :  { %s1813_s12 = smov 128   ;;  %s1814_s13 = smov 8  }
   0xd   :  { %21 = dma.hbm_to_vmem [thread:$0]  %s2049_s0, 256, %s16_s10, [#allocation3], %s1813_s12, %s1813_s12, %s1814_s13  }
   0xe   :  { %s1815_s16 = smov [#allocation5]  }
   0xf   :  { %s27_s17 = sshll.u32 %s1815_s16, 4  ;;  %s28_s17 = int_to_ptr.vmem [resolvable:$true] %s27_s17 }
  0x10   :  { %s1774_s18 = scalar_lea.vmem %s28_s17, 512  ;;  %p1779_p6 = scmp.lt.s32.totalorder %s28_s17, %s28_s17 }
  0x11   :  { %p1775_p5 = scmp.ne.s32.totalorder %s28_s17, %s1774_s18  ;;  %p1780_p7 = scmp.lt.s32.totalorder %s1774_s18, %s1774_s18 }
  0x13   :  { %p1781_p8 = por %p1780_p7, %p1779_p6 }
  0x15   :  { %p1782_p9 = pnand %p1781_p8, %p1775_p5 }
  0x17   :  { %1785 = shalt.err (!%p1782_p9)
}
  0x18   :  { %33 = dma.hbm_to_vmem [thread:$0]  %s2050_s1, 512, %s28_s17, [#allocation6], %s1813_s12, %s1813_s12, %s1814_s13  }
  0x19   :  { %1806 = dma.done.wait [#allocation3], 256  }
  0x1a   :  { %1807 = vsyncadd [#allocation3], 4294967040 }
  0x1b   :  { %1808 = dma.done.wait [#allocation6], 512  }
  0x1c   :  { %1809 = vsyncadd [#allocation6], 4294966784  ;;  %vm46_vm0 = vcmask 261120   ;;  %v45_v0 = vld [vmem:[#allocation5 + $0x18] sm:$0xff]  ;;  %v44_v1 = vld [vmem:[#allocation5 + $0x10] sm:$0xff]  ;;  %v1816_v6 = vmov 0.0   ;;  %v128_v12 = vlaneseq }
  0x1d   :  { %1603 = vmatprep.subr.mxu0 %v45_v0  ;;  %v40_v2 = vld [vmem:[#allocation2] sm:$0xff]  ;;  %v43_v3 = vld [vmem:[#allocation5 + $0x8] sm:$0xff]  ;;  %v42_v4 = vld [vmem:[#allocation5] sm:$0xff]  ;;  %1614 = vmatprep.subr.mxu1 %v1816_v6  ;;  %vm1817_vm1 = vmmov 0   ;;  %s1818_s0 = smov 96   ;;  %s1819_s1 = smov 64  }
  0x1e   :  { %1604 = vmatpush3.msra.mxu0 %v45_v0  ;;  %1611 = vmatprep.mubr.msk.f32.mxu0 %vm46_vm0, %v40_v2  ;;  %v41_v5 = vld [vmem:[#allocation2 + $0x8] sm:$0xff]  ;;  %s1820_s21 = smov 88   ;;  %s1821_s22 = smov 120   ;;  %vm136_vm2 = vcmask 64512   ;;  %v129_v13 = vshrl.u32 %v128_v12, 7  ;;  %v131_v14 = vand.u32 127, %v128_v12 }
  0x1f   :  { %1605 = vmatprep.subr.mxu0 %v44_v1  ;;  %1616 = vmatprep.mubr.msk.f32.mxu1 %vm1817_vm1, %v1816_v6  ;;  %s1822_s23 = smov 56   ;;  %s1823_s24 = smov 80   ;;  %vm820_vm4 = vcmask 130112   ;;  %vm1169_vm5 = vcmask 195712   ;;  %vm1518_vm6 = vcmask 261312  }
  0x20   :  { %1606 = vmatpush3.msra.mxu0 %v44_v1  ;;  %vm1894_vm3 = vcmp.le.s32.totalorder %v131_v14, %v129_v13  ;;  %s1824_s25 = smov 112   ;;  %s1825_s26 = smov 48  }
  0x21   :  { %1607 = vmatprep.subr.mxu0 %v43_v3  ;;  %s1826_s27 = smov 72   ;;  %s1827_s28 = smov 104  }
  0x22   :  { %1608 = vmatpush3.msra.mxu0 %v43_v3  ;;  %s1828_s29 = smov 40   ;;  %s1829_s30 = smov 16  }
  0x23   :  { %1609 = vmatprep.subr.mxu0 %v42_v4  ;;  %s1830_s3 = smov 24   ;;  %s1831_s4 = smov [#allocation7]  }
  0x24   :  { %1610 = vmatpush3.msra.mxu0 %v42_v4  ;;  %s1526_s5 = sshll.u32 %s1831_s4, 4  ;;  %s1527_s5 = int_to_ptr.vmem [resolvable:$true] %s1526_s5 }
  0x25   :  { %1612 = vmatmul.mubr.msk.f32.vlgmr.msra.gmra.mxu0 %vm46_vm0, %v41_v5  ;;  %1624 = vmatprep.subr.mxu0 %v1816_v6  ;;  %s1786_s6 = scalar_lea.vmem %s1527_s5, 256  ;;  %p1791_p11 = scmp.lt.s32.totalorder %s1527_s5, %s1527_s5 }
  0x26   :  { %1626 = vmatprep.mubr.msk.f32.mxu0 %vm1817_vm1, %v1816_v6  ;;  %p1787_p10 = scmp.ne.s32.totalorder %s1527_s5, %s1786_s6  ;;  %p1792_p12 = scmp.lt.s32.totalorder %s1786_s6, %s1786_s6 }
  0x28   :  { %p1793_p13 = por %p1792_p12, %p1791_p11 }
  0x2a   :  { %p1794_p0 = pnand %p1793_p13, %p1787_p10 }
  0xe5   :  { %v1867_v7 = vpop.f32.mrf.mxu0 }
  0xe7   :  { %v1869_v8 = vpop.f32.mrf.mxu0 }
  0xe8   :  { %134 = vrot.lane.b32.xlu0 %v1869_v8, %s1818_s0 }
  0xec   :  { %212 = vrot.lane.b32.xlu0 %v1867_v7, %s1818_s0 }
  0xf0   :  { %318 = vrot.lane.b32.xlu0 %v1869_v8, %s1819_s1 }
  0xf4   :  { %476 = vrot.lane.b32.xlu0 %v1869_v8, %s1820_s21 }
  0xf8   :  { %554 = vrot.lane.b32.xlu0 %v1867_v7, %s1820_s21 }
  0xfc   :  { %474 = vrot.lane.b32.xlu0 %v1869_v8, %s1821_s22 }
 0x100   :  { %552 = vrot.lane.b32.xlu0 %v1867_v7, %s1821_s22 }
 0x104   :  { %658 = vrot.lane.b32.xlu0 %v1869_v8, %s1822_s23 }
 0x15a   :  { %v135_v9 = vpop.permute.xlu0 %134 }
 0x15b   :  { %1615 = vmatpush3.xpose.msk.msra.mxu1 %vm136_vm2, %v135_v9 }
 0x15c   :  { %1619 = vmatprep.subr.mxu1 %v1816_v6 }
 0x15e   :  { %1617 = vmatmul.mubr.msk.f32.vlgmr.msra.gmra.mxu1 %vm136_vm2, %v1869_v8  ;;  %v213_v10 = vpop.permute.xlu0 %212 }
 0x15f   :  { %1620 = vmatpush3.xpose.msk.msra.mxu1 %vm136_vm2, %v213_v10  ;;  %1621 = vmatprep.mubr.msk.f32.mxu1 %vm1817_vm1, %v1816_v6 }
 0x160   :  { %1629 = vmatprep.subr.mxu1 %v1816_v6 }
 0x162   :  { %1622 = vmatmul.mubr.msk.f32.vlgmr.msra.gmra.mxu1 %vm136_vm2, %v1867_v7  ;;  %v319_v11 = vpop.permute.xlu0 %318 }
 0x163   :  { %1625 = vmatpush3.msra.mxu0 %v319_v11  ;;  %1631 = vmatprep.mubr.msk.f32.mxu1 %vm1817_vm1, %v1816_v6 }
 0x164   :  { %1634 = vmatprep.subr.mxu0 %v1816_v6 }
 0x166   :  { %v477_v24 = vpop.permute.xlu0 %476 }
 0x16a   :  { %v555_v29 = vpop.permute.xlu0 %554 }
 0x16e   :  { %v475_v33 = vpop.permute.xlu0 %474 }
 0x172   :  { %v553_v34 = vpop.permute.xlu0 %552 }
 0x176   :  { %v659_v37 = vpop.permute.xlu0 %658 }
 0x21e   :  { %v207_v16 = vpop.f32.mrf.mxu1 }
 0x21f   :  { %v290_v17 = vsel %vm1894_vm3, %v207_v16, -inf }
 0x220   :  { %v1618_v18 = vpop.f32.mrf.mxu1  ;;  %v292_v19 = vsel %vm136_vm2, %v290_v17, -inf }
 0x221   :  { %293 = vmax.xlane.f32.xlu1 %v292_v19 }
 0x222   :  { %v284_v20 = vpop.f32.mrf.mxu1 }
 0x223   :  { %v291_v21 = vsel %vm1894_vm3, %v284_v20, -inf }
 0x224   :  { %v1623_v22 = vpop.f32.mrf.mxu1  ;;  %v295_v23 = vsel %vm136_vm2, %v291_v21, -inf }
 0x225   :  { %296 = vmax.xlane.f32.xlu1 %v295_v23 }
 0x236   :  { %394 = vrot.lane.b32.xlu1 %v1867_v7, %s1819_s1 }
 0x23a   :  { %734 = vrot.lane.b32.xlu1 %v1867_v7, %s1822_s23 }
 0x23e   :  { %825 = vrot.lane.b32.xlu1 %v1869_v8, %s1823_s24 }
 0x2aa   :  { %v294_v25 = vpop.xlane.xlu1 %293 }
 0x2ab   :  { %v298_v26 = vsub.f32 %v290_v17, %v294_v25 }
 0x2ad   :  { %v300_v27 = vmul.f32 1.442695, %v298_v26 }
 0x2ae   :  { %v297_v28 = vpop.xlane.xlu1 %296 }
 0x2af   :  { %1714 = vpow2.f32 %v300_v27  ;;  %v299_v30 = vsub.f32 %v291_v21, %v297_v28 }
 0x2b1   :  { %v302_v31 = vmul.f32 1.442695, %v299_v30 }
 0x2b2   :  { %v395_v32 = vpop.permute.xlu1 %394 }
 0x2b3   :  { %1716 = vpow2.f32 %v302_v31  ;;  %1630 = vmatpush3.msra.mxu1 %v395_v32 }
 0x2b4   :  { %1639 = vmatprep.subr.mxu1 %v1816_v6 }
 0x2b6   :  { %v735_v38 = vpop.permute.xlu1 %734 }
 0x2ba   :  { %v826_v51 = vpop.permute.xlu1 %825 }
 0x2bc   :  { %v1911_v35 = vpop.eup %1714 }
 0x2bd   :  { %1627 = vmatmul.mubr.msk.f32.vlgmr.msra.gmra.mxu0 %vm136_vm2, %v1911_v35 }
 0x2be   :  { %1635 = vmatpush3.xpose.msk.msra.mxu0 %vm136_vm2, %v477_v24  ;;  %1636 = vmatprep.mubr.msk.f32.mxu0 %vm1817_vm1, %v1816_v6 }
 0x2bf   :  { %1644 = vmatprep.subr.mxu0 %v1816_v6 }
 0x2c0   :  { %v1919_v36 = vpop.eup %1716 }
 0x2c1   :  { %1632 = vmatmul.mubr.msk.f32.vlgmr.msra.gmra.mxu1 %vm136_vm2, %v1919_v36  ;;  %1637 = vmatmul.mubr.msk.f32.vlgmr.msra.gmra.mxu0 %vm136_vm2, %v475_v33 }
 0x2c2   :  { %1640 = vmatpush3.xpose.msk.msra.mxu1 %vm136_vm2, %v555_v29  ;;  %1645 = vmatpush3.msra.mxu0 %v659_v37 }
 0x2c3   :  { %1641 = vmatprep.mubr.msk.f32.mxu1 %vm1817_vm1, %v1816_v6  ;;  %1649 = vmatprep.subr.mxu1 %v1816_v6 }
 0x2c4   :  { %1646 = vmatprep.mubr.msk.f32.mxu0 %vm1817_vm1, %v1816_v6  ;;  %1654 = vmatprep.subr.mxu0 %v1816_v6 }
 0x2c5   :  { %1642 = vmatmul.mubr.msk.f32.vlgmr.msra.gmra.mxu1 %vm136_vm2, %v553_v34 }
 0x2c6   :  { %1650 = vmatpush3.msra.mxu1 %v735_v38  ;;  %1651 = vmatprep.mubr.msk.f32.mxu1 %vm1817_vm1, %v1816_v6 }
 0x2c7   :  { %1659 = vmatprep.subr.mxu1 %v1816_v6 }
 0x37d   :  { %v1935_v39 = vpop.f32.mrf.mxu0 }
 0x37f   :  { %v1628_v40 = vpop.f32.mrf.mxu0 }
 0x381   :  { %v1937_v41 = vpop.f32.mrf.mxu1  ;;  %v548_v42 = vpop.f32.mrf.mxu0 }
 0x382   :  { %v630_v43 = vsel %vm1894_vm3, %v548_v42, -inf }
 0x383   :  { %v1633_v44 = vpop.f32.mrf.mxu1  ;;  %v1638_v45 = vpop.f32.mrf.mxu0  ;;  %v632_v46 = vsel %vm136_vm2, %v630_v43, -inf }
 0x384   :  { %633 = vmax.xlane.f32.xlu1 %v632_v46 }
 0x385   :  { %v626_v47 = vpop.f32.mrf.mxu1 }
 0x386   :  { %v631_v48 = vsel %vm1894_vm3, %v626_v47, -inf }
 0x387   :  { %v1643_v49 = vpop.f32.mrf.mxu1  ;;  %v635_v50 = vsel %vm136_vm2, %v631_v48, -inf }
 0x388   :  { %636 = vmax.xlane.f32.xlu0 %v635_v50 }
 0x395   :  { %823 = vrot.lane.b32.xlu1 %v1869_v8, %s1824_s25 }
 0x399   :  { %1083 = vrot.lane.b32.xlu1 %v1867_v7, %s1825_s26 }
 0x39d   :  { %1174 = vrot.lane.b32.xlu1 %v1869_v8, %s1826_s27 }
 0x39e   :  { %903 = vrot.lane.b32.xlu0 %v1867_v7, %s1823_s24 }
 0x3a2   :  { %901 = vrot.lane.b32.xlu0 %v1867_v7, %s1824_s25 }
 0x3a6   :  { %1007 = vrot.lane.b32.xlu0 %v1869_v8, %s1825_s26 }
 0x40d   :  { %v634_v52 = vpop.xlane.xlu1 %633 }
 0x40e   :  { %v638_v53 = vsub.f32 %v630_v43, %v634_v52 }
 0x410   :  { %v640_v54 = vmul.f32 1.442695, %v638_v53 }
 0x411   :  { %v637_v55 = vpop.xlane.xlu0 %636  ;;  %v824_v61 = vpop.permute.xlu1 %823 }
 0x412   :  { %1718 = vpow2.f32 %v640_v54  ;;  %v639_v56 = vsub.f32 %v631_v48, %v637_v55 }
 0x414   :  { %v642_v57 = vmul.f32 1.442695, %v639_v56  ;;  %v304_v56 = vsel %vm136_vm2, %v1911_v35, 0.0 }
 0x415   :  { %v904_v58 = vpop.permute.xlu0 %903  ;;  %v1084_v0 = vpop.permute.xlu1 %1083 }
 0x416   :  { %1720 = vpow2.f32 %v642_v57 }
 0x419   :  { %v902_v59 = vpop.permute.xlu0 %901  ;;  %v1175_v17 = vpop.permute.xlu1 %1174 }
 0x41d   :  { %v1008_v63 = vpop.permute.xlu0 %1007 }
 0x41f   :  { %v1953_v60 = vpop.eup %1718 }
 0x420   :  { %1647 = vmatmul.mubr.msk.f32.vlgmr.msra.gmra.mxu0 %vm136_vm2, %v1953_v60  ;;  %v644_v44 = vsel %vm136_vm2, %v1953_v60, 0.0 }
 0x421   :  { %1655 = vmatpush3.xpose.msk.msra.mxu0 %vm136_vm2, %v826_v51  ;;  %1656 = vmatprep.mubr.msk.f32.mxu0 %vm1817_vm1, %v1816_v6 }
 0x422   :  { %1664 = vmatprep.subr.mxu0 %v1816_v6 }
 0x423   :  { %v1961_v62 = vpop.eup %1720 }
 0x424   :  { %1652 = vmatmul.mubr.msk.f32.vlgmr.msra.gmra.mxu1 %vm136_vm2, %v1961_v62  ;;  %1657 = vmatmul.mubr.msk.f32.vlgmr.msra.gmra.mxu0 %vm136_vm2, %v824_v61  ;;  %v647_v46 = vsel %vm136_vm2, %v1961_v62, 0.0 }
 0x425   :  { %1660 = vmatpush3.xpose.msk.msra.mxu1 %vm136_vm2, %v904_v58  ;;  %1665 = vmatpush3.msra.mxu0 %v1008_v63  ;;  %v307_v58 = vsel %vm136_vm2, %v1919_v36, 0.0 }
 0x426   :  { %1661 = vmatprep.mubr.msk.f32.mxu1 %vm1817_vm1, %v1816_v6  ;;  %1669 = vmatprep.subr.mxu1 %v1816_v6 }
 0x427   :  { %1666 = vmatprep.mubr.msk.f32.mxu0 %vm1817_vm1, %v1816_v6  ;;  %1674 = vmatprep.subr.mxu0 %v1816_v6 }
 0x428   :  { %1662 = vmatmul.mubr.msk.f32.vlgmr.msra.gmra.mxu1 %vm136_vm2, %v902_v59 }
 0x429   :  { %1670 = vmatpush3.msra.mxu1 %v1084_v0  ;;  %1671 = vmatprep.mubr.msk.f32.mxu1 %vm1817_vm1, %v1816_v6 }
 0x42a   :  { %1679 = vmatprep.subr.mxu1 %v1816_v6 }
 0x4e0   :  { %v1977_v1 = vpop.f32.mrf.mxu0 }
 0x4e2   :  { %v1648_v2 = vpop.f32.mrf.mxu0 }
 0x4e4   :  { %v1979_v3 = vpop.f32.mrf.mxu1  ;;  %v897_v4 = vpop.f32.mrf.mxu0 }
 0x4e5   :  { %v979_v5 = vsel %vm1894_vm3, %v897_v4, -inf }
 0x4e6   :  { %v1653_v9 = vpop.f32.mrf.mxu1  ;;  %v1658_v10 = vpop.f32.mrf.mxu0  ;;  %v981_v11 = vsel %vm136_vm2, %v979_v5, -inf }
 0x4e7   :  { %982 = vmax.xlane.f32.xlu1 %v981_v11 }
 0x4e8   :  { %v975_v12 = vpop.f32.mrf.mxu1 }
 0x4e9   :  { %v980_v13 = vsel %vm1894_vm3, %v975_v12, -inf }
 0x4ea   :  { %v1663_v14 = vpop.f32.mrf.mxu1  ;;  %v984_v16 = vsel %vm136_vm2, %v980_v13, -inf }
 0x4eb   :  { %985 = vmax.xlane.f32.xlu0 %v984_v16 }
 0x4f8   :  { %1172 = vrot.lane.b32.xlu1 %v1869_v8, %s1827_s28 }
 0x501   :  { %1252 = vrot.lane.b32.xlu0 %v1867_v7, %s1826_s27 }
 0x505   :  { %1250 = vrot.lane.b32.xlu0 %v1867_v7, %s1827_s28 }
 0x570   :  { %v983_v18 = vpop.xlane.xlu1 %982 }
 0x571   :  { %v987_v19 = vsub.f32 %v979_v5, %v983_v18 }
 0x573   :  { %v989_v20 = vmul.f32 1.442695, %v987_v19 }
 0x574   :  { %v986_v21 = vpop.xlane.xlu0 %985  ;;  %v1173_v27 = vpop.permute.xlu1 %1172 }
 0x575   :  { %1722 = vpow2.f32 %v989_v20  ;;  %v988_v22 = vsub.f32 %v980_v13, %v986_v21 }
 0x577   :  { %v991_v23 = vmul.f32 1.442695, %v988_v22 }
 0x578   :  { %v1253_v25 = vpop.permute.xlu0 %1252 }
 0x579   :  { %1724 = vpow2.f32 %v991_v23 }
 0x57c   :  { %v1251_v28 = vpop.permute.xlu0 %1250 }
 0x582   :  { %v1723_v24 = vpop.eup %1722 }
 0x583   :  { %1667 = vmatmul.mubr.msk.f32.vlgmr.msra.gmra.mxu0 %vm136_vm2, %v1723_v24  ;;  %v993_v15 = vsel %vm136_vm2, %v1723_v24, 0.0 }
 0x584   :  { %1675 = vmatpush3.xpose.msk.msra.mxu0 %vm136_vm2, %v1175_v17  ;;  %1676 = vmatprep.mubr.msk.f32.mxu0 %vm1817_vm1, %v1816_v6 }
 0x585   :  { %1684 = vmatprep.subr.mxu0 %v1816_v6 }
 0x586   :  { %v1725_v26 = vpop.eup %1724 }
 0x587   :  { %1672 = vmatmul.mubr.msk.f32.vlgmr.msra.gmra.mxu1 %vm136_vm2, %v1725_v26  ;;  %1677 = vmatmul.mubr.msk.f32.vlgmr.msra.gmra.mxu0 %vm136_vm2, %v1173_v27  ;;  %v996_v45 = vsel %vm136_vm2, %v1725_v26, 0.0 }
 0x588   :  { %1680 = vmatpush3.xpose.msk.msra.mxu1 %vm136_vm2, %v1253_v25  ;;  %1681 = vmatprep.mubr.msk.f32.mxu1 %vm1817_vm1, %v1816_v6 }
 0x589   :  { %1689 = vmatprep.subr.mxu1 %v1816_v6  ;;  %1686 = vmatprep.mubr.msk.f32.mxu0 %vm1817_vm1, %v1816_v6 }
 0x58b   :  { %1682 = vmatmul.mubr.msk.f32.vlgmr.msra.gmra.mxu1 %vm136_vm2, %v1251_v28 }
 0x58c   :  { %1691 = vmatprep.mubr.msk.f32.mxu1 %vm1817_vm1, %v1816_v6 }
 0x643   :  { %v2007_v29 = vpop.f32.mrf.mxu0 }
 0x645   :  { %v1668_v30 = vpop.f32.mrf.mxu0 }
 0x647   :  { %v2009_v31 = vpop.f32.mrf.mxu1  ;;  %v1246_v32 = vpop.f32.mrf.mxu0 }
 0x648   :  { %v1328_v33 = vsel %vm1894_vm3, %v1246_v32, -inf }
 0x649   :  { %v1673_v34 = vpop.f32.mrf.mxu1  ;;  %v1678_v37 = vpop.f32.mrf.mxu0  ;;  %v1330_v38 = vsel %vm136_vm2, %v1328_v33, -inf }
 0x64a   :  { %1331 = vmax.xlane.f32.xlu1 %v1330_v38 }
 0x64b   :  { %v1324_v40 = vpop.f32.mrf.mxu1 }
 0x64c   :  { %v1329_v42 = vsel %vm1894_vm3, %v1324_v40, -inf }
 0x64d   :  { %v1683_v43 = vpop.f32.mrf.mxu1  ;;  %v1333_v6 = vsel %vm136_vm2, %v1329_v42, -inf }
 0x64e   :  { %1334 = vmax.xlane.f32.xlu0 %v1333_v6 }
 0x65b   :  { %1432 = vrot.lane.b32.xlu1 %v1867_v7, %s1828_s29 }
 0x664   :  { %1356 = vrot.lane.b32.xlu0 %v1869_v8, %s1828_s29 }
 0x67f   :  { %645 = vadd.xlane.f32.xlu1 %v644_v44 }
 0x683   :  { %997 = vadd.xlane.f32.xlu1 %v996_v45  ;;  %648 = vadd.xlane.f32.xlu0 %v647_v46 }
 0x687   :  { %994 = vadd.xlane.f32.xlu0 %v993_v15 }
 0x6d3   :  { %v1332_v47 = vpop.xlane.xlu1 %1331 }
 0x6d4   :  { %v1336_v48 = vsub.f32 %v1328_v33, %v1332_v47 }
 0x6d6   :  { %v1338_v49 = vmul.f32 1.442695, %v1336_v48 }
 0x6d7   :  { %v1433_v7 = vpop.permute.xlu1 %1432  ;;  %v1335_v50 = vpop.xlane.xlu0 %1334 }
 0x6d8   :  { %1726 = vpow2.f32 %v1338_v49  ;;  %v1337_v8 = vsub.f32 %v1329_v42, %v1335_v50  ;;  %1690 = vmatpush3.msra.mxu1 %v1433_v7 }
 0x6da   :  { %v1340_v51 = vmul.f32 1.442695, %v1337_v8 }
 0x6db   :  { %v1357_v52 = vpop.permute.xlu0 %1356 }
 0x6dc   :  { %1728 = vpow2.f32 %v1340_v51  ;;  %1685 = vmatpush3.msra.mxu0 %v1357_v52 }
 0x6e5   :  { %v1727_v53 = vpop.eup %1726 }
 0x6e6   :  { %1687 = vmatmul.mubr.msk.f32.vlgmr.msra.gmra.mxu0 %vm136_vm2, %v1727_v53  ;;  %v1342_v54 = vsel %vm136_vm2, %v1727_v53, 0.0 }
 0x6e7   :  { %1343 = vadd.xlane.f32.xlu0 %v1342_v54 }
 0x6e9   :  { %v1729_v55 = vpop.eup %1728 }
 0x6ea   :  { %1692 = vmatmul.mubr.msk.f32.vlgmr.msra.gmra.mxu1 %vm136_vm2, %v1729_v55  ;;  %v1345_v57 = vsel %vm136_vm2, %v1729_v55, 0.0 }
 0x6eb   :  { %305 = vadd.xlane.f32.xlu0 %v304_v56  ;;  %1346 = vadd.xlane.f32.xlu1 %v1345_v57 }
 0x6ef   :  { %308 = vadd.xlane.f32.xlu1 %v307_v58 }
 0x708   :  { %v646_v59 = vpop.xlane.xlu1 %645 }
 0x709   :  { %1730 = vrcp.f32 %v646_v59 }
 0x70c   :  { %v998_v60 = vpop.xlane.xlu1 %997  ;;  %v649_v61 = vpop.xlane.xlu0 %648 }
 0x70d   :  { %1732 = vrcp.f32 %v998_v60 }
 0x70e   :  { %1734 = vrcp.f32 %v649_v61 }
 0x710   :  { %v995_v62 = vpop.xlane.xlu0 %994 }
 0x711   :  { %1736 = vrcp.f32 %v995_v62 }
 0x716   :  { %v1731_v63 = vpop.eup %1730 }
 0x717   :  { %v652_v0 = vmul.f32 %v1731_v63, %v646_v59 }
 0x719   :  { %v654_v2 = vsub.f32 2.0, %v652_v0 }
 0x71a   :  { %v1733_v35 = vpop.eup %1732 }
 0x71b   :  { %v1735_v4 = vpop.eup %1734  ;;  %v1002_v5 = vmul.f32 %v1733_v35, %v998_v60  ;;  %v656_v9 = vmul.f32 %v1731_v63, %v654_v2 }
 0x71c   :  { %v653_v10 = vmul.f32 %v1735_v4, %v649_v61 }
 0x71d   :  { %v1004_v11 = vsub.f32 2.0, %v1002_v5  ;;  %v810_v36 = vmul.f32 %v1977_v1, %v656_v9 }
 0x71e   :  { %v1737_v12 = vpop.eup %1736  ;;  %v655_v13 = vsub.f32 2.0, %v653_v10 }
 0x71f   :  { %v1006_v14 = vmul.f32 %v1733_v35, %v1004_v11  ;;  %v1001_v16 = vmul.f32 %v1737_v12, %v995_v62  ;;  %814 = vrot.lane.b32.xlu0 %v810_v36, %s1814_s13 }
 0x720   :  { %v657_v17 = vmul.f32 %v1735_v4, %v655_v13 }
 0x721   :  { %v1003_v18 = vsub.f32 2.0, %v1001_v16  ;;  %v1160_v19 = vmul.f32 %v2009_v31, %v1006_v14 }
 0x722   :  { %v811_v20 = vmul.f32 %v1979_v3, %v657_v17 }
 0x723   :  { %v1005_v21 = vmul.f32 %v1737_v12, %v1003_v18  ;;  %1165 = vrot.lane.b32.xlu0 %v1160_v19, %s1829_s30 }
 0x724   :  { %816 = vrot.lane.b32.xlu1 %v811_v20, %s1814_s13 }
 0x725   :  { %v1159_v22 = vmul.f32 %v2007_v29, %v1005_v21 }
 0x728   :  { %1163 = vrot.lane.b32.xlu1 %v1159_v22, %s1829_s30 }
 0x770   :  { %v1344_v1 = vpop.xlane.xlu0 %1343 }
 0x774   :  { %v1347_v23 = vpop.xlane.xlu1 %1346  ;;  %v306_v24 = vpop.xlane.xlu0 %305 }
 0x775   :  { %1738 = vrcp.f32 %v306_v24 }
 0x778   :  { %v309_v25 = vpop.xlane.xlu1 %308 }
 0x779   :  { %1740 = vrcp.f32 %v309_v25 }
 0x77a   :  { %1742 = vrcp.f32 %v1344_v1 }
 0x77b   :  { %1744 = vrcp.f32 %v1347_v23 }
 0x782   :  { %v1739_v26 = vpop.eup %1738 }
 0x783   :  { %v312_v27 = vmul.f32 %v1739_v26, %v306_v24 }
 0x785   :  { %v314_v30 = vsub.f32 2.0, %v312_v27 }
 0x786   :  { %v1741_v28 = vpop.eup %1740 }
 0x787   :  { %v313_v31 = vmul.f32 %v1741_v28, %v309_v25  ;;  %v316_v3 = vmul.f32 %v1739_v26, %v314_v30  ;;  %v1743_v42 = vpop.eup %1742 }
 0x788   :  { %v1745_v6 = vpop.eup %1744 }
 0x789   :  { %v315_v32 = vsub.f32 2.0, %v313_v31  ;;  %v470_v33 = vmul.f32 %v1935_v39, %v316_v3  ;;  %v1350_v39 = vmul.f32 %v1743_v42, %v1344_v1  ;;  %v1351_v45 = vmul.f32 %v1745_v6, %v1347_v23 }
 0x78b   :  { %v317_v34 = vmul.f32 %v1741_v28, %v315_v32  ;;  %472 = vst.msk [vmem:[#allocation7] sm:$0xff] %vm136_vm2, %v470_v33  ;;  %v1352_v44 = vsub.f32 2.0, %v1350_v39  ;;  %v1353_v46 = vsub.f32 2.0, %v1351_v45 }
 0x78d   :  { %v471_v29 = vmul.f32 %v1937_v41, %v317_v34  ;;  %v1354_v41 = vmul.f32 %v1743_v42, %v1352_v44  ;;  %v1355_v49 = vmul.f32 %v1745_v6, %v1353_v46 }
 0x78f   :  { %473 = vst.msk [vmem:[#allocation7 + $0x8] sm:$0xff] %vm136_vm2, %v471_v29 }
 0x791   :  { %v815_v37 = vpop.permute.xlu0 %814 }
 0x792   :  { %821 = vst.msk [vmem:[#allocation7] sm:$0xff] %vm820_vm4, %v815_v37 }
 0x795   :  { %v1166_v38 = vpop.permute.xlu0 %1165 }
 0x796   :  { %v817_v40 = vpop.permute.xlu1 %816 }
 0x797   :  { %822 = vst.msk [vmem:[#allocation7 + $0x8] sm:$0xff] %vm820_vm4, %v817_v40 }
 0x798   :  { %1171 = vst.msk [vmem:[#allocation7 + $0x8] sm:$0xff] %vm1169_vm5, %v1166_v38 }
 0x79a   :  { %v1164_v43 = vpop.permute.xlu1 %1163 }
 0x79b   :  { %1170 = vst.msk [vmem:[#allocation7] sm:$0xff] %vm1169_vm5, %v1164_v43 }
 0x7a6   :  { %v1428_v15 = vpop.f32.mrf.mxu0 }
 0x7a7   :  { %v1508_v47 = vmul.f32 %v1428_v15, %v1354_v41 }
 0x7a8   :  { %v1688_v48 = vpop.f32.mrf.mxu0 }
 0x7a9   :  { %1512 = vrot.lane.b32.xlu1 %v1508_v47, %s1830_s3 }
 0x7aa   :  { %v1504_v7 = vpop.f32.mrf.mxu1 }
 0x7ab   :  { %v1509_v50 = vmul.f32 %v1504_v7, %v1355_v49 }
 0x7ac   :  { %v1693_v8 = vpop.f32.mrf.mxu1 }
 0x7ad   :  { %1514 = vrot.lane.b32.xlu0 %v1509_v50, %s1830_s3 }
 0x81b   :  { %v1513_v51 = vpop.permute.xlu1 %1512 }
 0x81c   :  { %1519 = vst.msk [vmem:[#allocation7] sm:$0xff] %vm1518_vm6, %v1513_v51 }
 0x81f   :  { %v1515_v52 = vpop.permute.xlu0 %1514 }
 0x820   :  { %1520 = vst.msk [vmem:[#allocation7 + $0x8] sm:$0xff] %vm1518_vm6, %v1515_v52 }
 0x821   :  { %1797 = shalt.err (!%p1794_p0)
}
 0x822   :  { %1532 = dma.vmem_to_hbm [thread:$0]  %s1527_s5, 256, %s2051_s2, [#allocation4], %s1813_s12, %s1813_s12, %s1814_s13  }
 0x823   :  { %1810 = dma.done.wait [#allocation4], 256  }
 0x824   :  { %1811 = vsyncadd [#allocation4], 4294967040 }
 0x825   :  { %1536 = vsyncpa [#allocation3], 1 }
 0x826   :  { %1537 = vsyncpa [#allocation6], 1 }
 0x827   :  { %1538 = vsyncpa [#allocation4], 1 }

</bundles_post_ra>
